<compile_context>
chip_gen: v6e
topology: v6e:2x2x1
jax: 0.10.0
libtpu: 0.0.40
codegen_flags: <defaults>
</compile_context>

<pallas_src>
import functools

import jax
import jax.numpy as jnp
from jax.experimental import pallas as pl
from jax.experimental.pallas import tpu as pltpu

_INV_SQRT2 = 0.7071067811865476


def _erf_approx(x):
    """Polynomial erf (Abramowitz & Stegun 7.1.26, |err| <= 1.5e-7).

    Built only from exp/mul/add so it always lowers on Mosaic; matches
    torch.nn.GELU()'s exact-erf numerics to ~1e-7.
    """
    a = jnp.abs(x)
    t = 1.0 / (1.0 + 0.3275911 * a)
    poly = t * (0.254829592
                + t * (-0.284496736
                       + t * (1.421413741
                              + t * (-1.453152027 + t * 1.061405429))))
    y = 1.0 - poly * jnp.exp(-(a * a))
    return jnp.where(x >= 0, y, -y)


def _mlp_kernel(x_ref, w1_ref, b1_ref, w2_ref, b2_ref, o_ref, *, approximate_gelu):
    # Cast the activation tile to the MXU compute dtype in-kernel (hidden under
    # the matmul) instead of a separate HBM pass in the wrapper.
    x = x_ref[...]
    if x.dtype != w1_ref.dtype:
        x = x.astype(w1_ref.dtype)

    # fc1: (TM, C_in) @ (C_in, H) on the MXU, f32 accumulation.
    h = jnp.dot(x, w1_ref[...], preferred_element_type=jnp.float32)
    h = h + b1_ref[...]                      # (1, H) f32 bias broadcasts over rows

    if approximate_gelu:
        # tanh GELU -> EUP slot, hides under the MXU on v6e/v7x.
        h = jax.nn.gelu(h, approximate=True)
    else:
        # erf GELU matching torch.nn.GELU() default numerics (~1.5e-7).
        h = 0.5 * h * (1.0 + _erf_approx(h * _INV_SQRT2))

    # dropout(p=0.0) == identity

    # fc2: (TM, H) @ (H, C_out), f32 accumulation.
    o = jnp.dot(h.astype(w2_ref.dtype), w2_ref[...],
                preferred_element_type=jnp.float32)
    o = o + b2_ref[...]
    o_ref[...] = o.astype(o_ref.dtype)


def _round_up(v, m):
    return ((v + m - 1) // m) * m


def mlp_pallas(x, w1, b1, w2, b2, *, block_m=512,
               compute_dtype=jnp.bfloat16, approximate_gelu=True):
    """ViT Mlp forward.  x: (B, N, C_in); weights stored as (in, out)."""
    B, N, C_in = x.shape
    H = w1.shape[1]
    C_out = w2.shape[1]
    M = B * N
    out_dtype = x.dtype

    # Reshape is a layout no-op; no padding / dtype pass over the activations.
    x2d = x.reshape(M, C_in)
    w1c = w1.astype(compute_dtype)
    w2c = w2.astype(compute_dtype)
    b1_2d = b1.reshape(1, H).astype(jnp.float32)
    b2_2d = b2.reshape(1, C_out).astype(jnp.float32)

    # Token-tile size: multiple of 8 sublanes (or the full M); last block ragged.
    tm = min(block_m, M)
    if tm != M:
        tm = _round_up(tm, 8)
    # Guarantee >= 2 grid steps so the "parallel" axis can use both TensorCores
    # on v7x (no effect on v5e/v6e, which have a single TC).
    if M >= 16 and pl.cdiv(M, tm) < 2:
        tm = _round_up(pl.cdiv(M, 2), 8)
    grid = (pl.cdiv(M, tm),)

    # VMEM budget from actual buffer sizes: single-buffered params,
    # double-buffered activation/output tiles, plus kernel intermediates.
    cb = jnp.dtype(compute_dtype).itemsize
    xb = jnp.dtype(x.dtype).itemsize
    ob = jnp.dtype(out_dtype).itemsize
    param_bytes = (C_in * H + H * C_out) * cb + (H + C_out) * 4
    io_bytes = 2 * tm * C_in * xb + 2 * tm * C_out * ob
    inter_bytes = tm * H * 4 + tm * H * cb + tm * C_out * 4
    vmem_limit = int(1.5 * (param_bytes + io_bytes + inter_bytes)) + (8 << 20)
    vmem_limit = max(vmem_limit, 32 << 20)
    try:
        vmem_limit = min(vmem_limit, pltpu.get_tpu_info().vmem_capacity_bytes)
    except Exception:
        vmem_limit = min(vmem_limit, 64 << 20)   # safe across v5e/v6e/v7x

    cost = pl.CostEstimate(
        flops=2 * M * (C_in * H + H * C_out),
        transcendentals=M * H,
        bytes_accessed=(M * C_in * xb + M * C_out * ob
                        + (C_in * H + H * C_out) * cb + (H + C_out) * 4),
    )

    # Constant-index parameters: one pipeline buffer (DMA'd once per call).
    resident = pl.Buffered(1)

    out = pl.pallas_call(
        functools.partial(_mlp_kernel, approximate_gelu=approximate_gelu),
        out_shape=jax.ShapeDtypeStruct((M, C_out), out_dtype),
        grid=grid,
        in_specs=[
            pl.BlockSpec((tm, C_in), lambda i: (i, 0)),                         # x tile
            pl.BlockSpec((C_in, H), lambda i: (0, 0), pipeline_mode=resident),  # w1
            pl.BlockSpec((1, H), lambda i: (0, 0), pipeline_mode=resident),     # b1
            pl.BlockSpec((H, C_out), lambda i: (0, 0), pipeline_mode=resident), # w2
            pl.BlockSpec((1, C_out), lambda i: (0, 0), pipeline_mode=resident), # b2
        ],
        out_specs=pl.BlockSpec((tm, C_out), lambda i: (i, 0)),
        compiler_params=pltpu.CompilerParams(
            dimension_semantics=("parallel",),
            vmem_limit_bytes=vmem_limit,
        ),
        cost_estimate=cost,
    )(x2d, w1c, b1_2d, w2c, b2_2d)

    return out.reshape(B, N, C_out)


def mlp_reference(x, w1, b1, w2, b2):
    h = jnp.dot(x, w1) + b1
    h = 0.5 * h * (1.0 + jax.lax.erf(h * _INV_SQRT2))     # nn.GELU() default
    return jnp.dot(h, w2) + b2


if __name__ == "__main__":
    # Small ViT-style shapes: batch=2, tokens=8, in=32, hidden=4*32=128, out=32.
    B, N = 2, 8
    in_features = 32
    hidden_features = 4 * in_features
    out_features = in_features

    key = jax.random.PRNGKey(0)
    kx, k1, kb1, k2, kb2 = jax.random.split(key, 5)

    x = jax.random.normal(kx, (B, N, in_features), dtype=jnp.float32)
    w1 = jax.random.normal(k1, (in_features, hidden_features), jnp.float32) * 0.05
    b1 = jax.random.normal(kb1, (hidden_features,), jnp.float32) * 0.01
    w2 = jax.random.normal(k2, (hidden_features, out_features), jnp.float32) * 0.05
    b2 = jax.random.normal(kb2, (out_features,), jnp.float32) * 0.01

    y_ref = mlp_reference(x, w1, b1, w2, b2)

    # Default perf path: bf16 MXU operands, tanh-approx GELU, f32 accumulation.
    y = mlp_pallas(x, w1, b1, w2, b2)
    jax.block_until_ready(y)
    assert y.shape == (B, N, out_features)
    assert jnp.allclose(y, y_ref, atol=2e-2, rtol=2e-2), "bf16/tanh path mismatch"

    # Strict parity path: f32 operands + erf GELU must match the reference.
    y_f32 = mlp_pallas(x, w1, b1, w2, b2,
                       compute_dtype=jnp.float32, approximate_gelu=False)
    jax.block_until_ready(y_f32)
    assert jnp.allclose(y_f32, y_ref, atol=1e-4, rtol=1e-4), "f32 path mismatch"

    # Ragged multi-step grid (M not a multiple of the tile).
    x_big = jax.random.normal(kx, (2, 200, in_features), dtype=jnp.float32)
    y_big = mlp_pallas(x_big, w1, b1, w2, b2, block_m=64)
    jax.block_until_ready(y_big)
    y_big_ref = mlp_reference(x_big, w1, b1, w2, b2)
    assert y_big.shape == (2, 200, out_features)
    assert jnp.allclose(y_big, y_big_ref, atol=2e-2, rtol=2e-2), "ragged path mismatch"

    # bf16-in / bf16-out path (no wrapper casts over the activations at all).
    y_bf16 = mlp_pallas(x.astype(jnp.bfloat16), w1, b1, w2, b2)
    jax.block_until_ready(y_bf16)
    assert y_bf16.dtype == jnp.bfloat16
    assert jnp.allclose(y_bf16.astype(jnp.float32), y_ref, atol=3e-2, rtol=3e-2), \
        "bf16 io path mismatch"

    print("KERNEL_OK")
</pallas_src>

<mosaic_0001>
module attributes {stable_mosaic.version = 11 : i64} {
  func.func @_mlp_kernel(%arg0: i32, %arg1: memref<8x32xf32, #tpu.memory_space<vmem>>, %arg2: memref<32x128xbf16, #tpu.memory_space<vmem>>, %arg3: memref<1x128xf32, #tpu.memory_space<vmem>>, %arg4: memref<128x32xbf16, #tpu.memory_space<vmem>>, %arg5: memref<1x32xf32, #tpu.memory_space<vmem>>, %arg6: memref<8x32xf32, #tpu.memory_space<vmem>>) attributes {dimension_semantics = [#tpu.dimension_semantics<parallel>], iteration_bounds = array<i64: 2>, scalar_prefetch = 0 : i64, scratch_operands = 0 : i64, tpu.core_type = #tpu.core_type<tc>, window_params = [{transform_indices = @transform_0, window_bounds = array<i64: 8, 32>}, {pipeline_mode = #tpu.pipeline_mode<synchronous>, transform_indices = @transform_1, window_bounds = array<i64: 32, 128>}, {pipeline_mode = #tpu.pipeline_mode<synchronous>, transform_indices = @transform_2, window_bounds = array<i64: 1, 128>}, {pipeline_mode = #tpu.pipeline_mode<synchronous>, transform_indices = @transform_3, window_bounds = array<i64: 128, 32>}, {pipeline_mode = #tpu.pipeline_mode<synchronous>, transform_indices = @transform_4, window_bounds = array<i64: 1, 32>}, {transform_indices = @transform_5, window_bounds = array<i64: 8, 32>}]} {
    %c0 = arith.constant 0 : index
    %c0_0 = arith.constant 0 : index
    %0 = vector.load %arg1[%c0, %c0_0] : memref<8x32xf32, #tpu.memory_space<vmem>>, vector<8x32xf32>
    %1 = arith.truncf %0 : vector<8x32xf32> to vector<8x32xbf16>
    %c0_1 = arith.constant 0 : index
    %c0_2 = arith.constant 0 : index
    %2 = vector.load %arg2[%c0_1, %c0_2] : memref<32x128xbf16, #tpu.memory_space<vmem>>, vector<32x128xbf16>
    %cst = arith.constant dense<0.000000e+00> : vector<8x128xf32>
    %3 = tpu.matmul %1, %2, %cst {dimension_numbers = #tpu.dot_dimension_numbers<[1], [0], [0], [1], [0, 0, 1, 1], [], []>} : vector<8x32xbf16>, vector<32x128xbf16>, vector<8x128xf32> -> vector<8x128xf32>
    %c0_3 = arith.constant 0 : index
    %c0_4 = arith.constant 0 : index
    %4 = vector.load %arg3[%c0_3, %c0_4] : memref<1x128xf32, #tpu.memory_space<vmem>>, vector<1x128xf32>
    %5 = vector.broadcast %4 : vector<1x128xf32> to vector<8x128xf32>
    %6 = arith.addf %3, %5 : vector<8x128xf32>
    %7 = arith.mulf %6, %6 : vector<8x128xf32>
    %8 = arith.mulf %6, %7 : vector<8x128xf32>
    %cst_5 = arith.constant 4.471500e-02 : f32
    %9 = vector.broadcast %cst_5 : f32 to vector<8x128xf32>
    %10 = arith.mulf %9, %8 : vector<8x128xf32>
    %11 = arith.addf %6, %10 : vector<8x128xf32>
    %cst_6 = arith.constant 0.797884583 : f32
    %12 = vector.broadcast %cst_6 : f32 to vector<8x128xf32>
    %13 = arith.mulf %12, %11 : vector<8x128xf32>
    %14 = math.tanh %13 : vector<8x128xf32>
    %cst_7 = arith.constant 1.000000e+00 : f32
    %15 = vector.broadcast %cst_7 : f32 to vector<8x128xf32>
    %16 = arith.addf %15, %14 : vector<8x128xf32>
    %cst_8 = arith.constant 5.000000e-01 : f32
    %17 = vector.broadcast %cst_8 : f32 to vector<8x128xf32>
    %18 = arith.mulf %17, %16 : vector<8x128xf32>
    %19 = arith.mulf %6, %18 : vector<8x128xf32>
    %20 = arith.truncf %19 : vector<8x128xf32> to vector<8x128xbf16>
    %c0_9 = arith.constant 0 : index
    %c0_10 = arith.constant 0 : index
    %21 = vector.load %arg4[%c0_9, %c0_10] : memref<128x32xbf16, #tpu.memory_space<vmem>>, vector<128x32xbf16>
    %cst_11 = arith.constant dense<0.000000e+00> : vector<8x32xf32>
    %22 = tpu.matmul %20, %21, %cst_11 {dimension_numbers = #tpu.dot_dimension_numbers<[1], [0], [0], [1], [0, 0, 1, 1], [], []>} : vector<8x128xbf16>, vector<128x32xbf16>, vector<8x32xf32> -> vector<8x32xf32>
    %c0_12 = arith.constant 0 : index
    %c0_13 = arith.constant 0 : index
    %23 = vector.load %arg5[%c0_12, %c0_13] : memref<1x32xf32, #tpu.memory_space<vmem>>, vector<1x32xf32>
    %24 = vector.broadcast %23 : vector<1x32xf32> to vector<8x32xf32>
    %25 = arith.addf %22, %24 : vector<8x32xf32>
    %c0_14 = arith.constant 0 : index
    %c0_15 = arith.constant 0 : index
    %26 = vector.load %arg6[%c0_14, %c0_15] : memref<8x32xf32, #tpu.memory_space<vmem>>, vector<8x32xf32>
    tpu.vector_store %arg6[%c0_14, %c0_15], %25 {strides = array<i32>} : memref<8x32xf32, #tpu.memory_space<vmem>>, vector<8x32xf32>,
    return
  }
  func.func @transform_0(%arg0: i32) -> (i32, i32) {
    %c0_i32 = arith.constant 0 : i32
    %c0_i32_0 = arith.constant 0 : i32
    return %arg0, %c0_i32 : i32, i32
  }
  func.func @transform_1(%arg0: i32) -> (i32, i32) {
    %c0_i32 = arith.constant 0 : i32
    %c0_i32_0 = arith.constant 0 : i32
    %c0_i32_1 = arith.constant 0 : i32
    return %c0_i32, %c0_i32_0 : i32, i32
  }
  func.func @transform_2(%arg0: i32) -> (i32, i32) {
    %c0_i32 = arith.constant 0 : i32
    %c0_i32_0 = arith.constant 0 : i32
    %c0_i32_1 = arith.constant 0 : i32
    return %c0_i32, %c0_i32_0 : i32, i32
  }
  func.func @transform_3(%arg0: i32) -> (i32, i32) {
    %c0_i32 = arith.constant 0 : i32
    %c0_i32_0 = arith.constant 0 : i32
    %c0_i32_1 = arith.constant 0 : i32
    return %c0_i32, %c0_i32_0 : i32, i32
  }
  func.func @transform_4(%arg0: i32) -> (i32, i32) {
    %c0_i32 = arith.constant 0 : i32
    %c0_i32_0 = arith.constant 0 : i32
    %c0_i32_1 = arith.constant 0 : i32
    return %c0_i32, %c0_i32_0 : i32, i32
  }
  func.func @transform_5(%arg0: i32) -> (i32, i32) {
    %c0_i32 = arith.constant 0 : i32
    %c0_i32_0 = arith.constant 0 : i32
    return %arg0, %c0_i32 : i32, i32
  }
}

</mosaic_0001>

<bundles_post_ra>
// kernel: tpu_custom_call.1
= control target key start
LH: loop header
LB: loop body
LE: loop exit
PB: predicated region body
PF: predicated region fallthrough
CT: control target
= control target key end

     0   :  { %10 = vsyncpa [#allocation3], 0  ;;  %s833_s0 = inlined_call_operand.vmem [shape: f32[16,32], index: 0, kind: input, shape index: {}]   ;;  %s834_s1 = inlined_call_operand.vmem [shape: bf16[32,128], index: 1, kind: input, shape index: {}]   ;;  %s835_s2 = inlined_call_operand.vmem [shape: f32[1,128], index: 2, kind: input, shape index: {}]   ;;  %s836_s3 = inlined_call_operand.vmem [shape: bf16[128,32], index: 3, kind: input, shape index: {}]   ;;  %s837_s4 = inlined_call_operand.vmem [shape: f32[1,32], index: 4, kind: input, shape index: {}]   ;;  %s838_s5 = inlined_call_operand.hbm [shape: f32[16,32], index: 5, kind: output, shape index: {}]  }
   0x1   :  { %12 = vsyncpa [#allocation3 + $0x1], 0  ;;  %s696_s18 = smov 0   ;;  %s698_s19 = smov 0  }
   0x2   :  { %s700_s20 = smov 0   ;;  %s702_s21 = smov 0  }
   0x3 LB: > { %s717_s22 = sadd.s32 4294967295, %s661_s21   ;;  %s485_s23 = sadd.s32 4294967294, %s661_s21   ;;  %s661_s21 = sphi %s702_s21, %s844_s21   ;;  %s657_s20 = sphi %s700_s20, %s843_s20   ;;  %s653_s19 = sphi %s698_s19, %s842_s19   ;;  %s649_s18 = sphi %s696_s18, %s841_s18  }
   0x4   : > { %s721_s24 = sadd.s32 1, %s661_s21   ;;  %s135_s25 = sadd.s32 1, %s657_s20 }
   0x5   : > { %s132_s26 = ssub.s32 %s661_s21, %s721_s24  ;;  %p145_p0 = scmp.ne.s32.totalorder %s657_s20, %s653_s19 }
   0x6   : > { %p133_p1 = scmp.eq.s32.totalorder %s132_s26, 0  ;;  %p146_p2 = scmp.eq.s32.totalorder %s717_s22, 1 }
   0x7   : > { %p151_p3 = scmp.ne.s32.totalorder %s653_s19, %s649_s18  ;;  %p152_p4 = scmp.eq.s32.totalorder %s485_s23, 1 }
   0x8   : > { %s732_s27 = scalar_select %p133_p1, %s657_s20, %s135_s25  }
   0x9   : > { %p734_p5 = por %p146_p2, %p145_p0  ;;  %p738_p6 = por %p152_p4, %p151_p3 }
   0xa   : > { %p488_p7 = scmp.ge.s32.totalorder %s661_s21, 1  ;;  %p189_p8 = scmp.lt.s32.totalorder %s661_s21, 3 }
   0xc   : > { %p190_p9 = pnand %p488_p7, %p189_p8 }
   0xd   : > { %p216_p10 = scmp.lt.s32.totalorder (!%p190_p9), %s717_s22, 1  ;;  %s213_s16 = sand.u32 (!%p190_p9), 1, %s653_s19  }
   0xe   : > { %193 = sbr.rel (%p190_p9) target bundleno = 464 (0x1d0), region = 40  ;;  %s489_s17 = sshll.u32 (!%p190_p9), %s213_s16, 3 }
   0xf   : > { %s505_s26 = sshll.u32 (!%p190_p9), %s717_s22, 7  ;;  %s215_s30 = scalar_lea.vmem (!%p190_p9), [#allocation2], %s489_s17 }
  0x10   : > { %s426_s6 = sshll.u32 (!%p190_p9), %s215_s30, 4  ;;  %s665_s11 = smov (!%p190_p9), [#allocation2]   ;;  %s793_s6 = int_to_ptr.vmem [resolvable:$true] %s426_s6 }
  0x11   : > { %s605_s12 = sshll.u32 (!%p190_p9), %s665_s11, 4  ;;  %s606_s12 = int_to_ptr.vmem [resolvable:$false] %s605_s12 }
  0x12   : > { %p608_p0 = scmp.lt.s32.totalorder (!%p190_p9), %s793_s6, %s606_s12 }
  0x13   : > { %v589_v0 = vld [vmem:[%s834_s1 + $0x8] sm:$0xff]   ;;  %v663_v1 = vmov 0.0   ;;  %v590_v2 = vld [vmem:[%s834_s1] sm:$0xff]   ;;  %vm664_vm0 = vmmov 0   ;;  %s217_s9 = scalar_select %p216_p10, %s717_s22, 1  ;;  %vm246_vm1 = vcmask 261120  }
  0x14   : > { %520 = vmatprep.subr.bf16.mxu0 %v663_v1  ;;  %528 = vmatprep.subr.bf16.mxu1 %v663_v1  ;;  %v591_v5 = vld [vmem:[%s836_s3 + $0x38] sm:$0xff]   ;;  %v592_v6 = vld [vmem:[%s836_s3 + $0x30] sm:$0xff]   ;;  %v593_v7 = vld [vmem:[%s836_s3 + $0x28] sm:$0xff]   ;;  %s601_s22 = scalar_lea.vmem %s793_s6, 128 }
  0x15   : > { %521 = vmatpush3.bf16.msra.mxu0 %v589_v0  ;;  %524 = vmatprep.mubr.msk.bf16.mxu0 %vm664_vm0, %v663_v1  ;;  %s490_s10 = sshll.u32 %s217_s9, 3  ;;  %v594_v8 = vld [vmem:[%s836_s3 + $0x20] sm:$0xff]   ;;  %v595_v9 = vld [vmem:[%s836_s3 + $0x18] sm:$0xff]   ;;  %v596_v10 = vld [vmem:[%s836_s3 + $0x10] sm:$0xff]   ;;  %s791_s9 = scalar_lea.hbm %s838_s5, %s505_s26 }
  0x16   : > { %522 = vmatprep.subr.bf16.mxu0 %v663_v1  ;;  %544 = vmatprep.mubr.msk.bf16.mxu1 %vm664_vm0, %v663_v1  ;;  %s219_s13 = scalar_lea.vmem %s833_s0, %s490_s10  ;;  %v597_v11 = vld [vmem:[%s836_s3 + $0x8] sm:$0xff]   ;;  %v598_v12 = vld [vmem:[%s836_s3] sm:$0xff]   ;;  %s413_s10 = scalar_lea.sflag [#allocation3], %s213_s16 }
  0x17   : > { %v221_v3 = vld [vmem:[%s219_s13] sm:$0xff]  ;;  %529 = vmatpush3.bf16.msra.mxu1 %v591_v5  ;;  %p602_p11 = scmp.ne.s32.totalorder %s793_s6, %s601_s22  ;;  %s607_s13 = scalar_lea.vmem %s606_s12, 256 }
  0x18   : > { %v222_v4 = vpack.c.bf16 %v221_v3, %v221_v3  ;;  %530 = vmatprep.subr.bf16.mxu1 %v663_v1  ;;  %v491_v13 = vld [vmem:[%s835_s2] ss:$0 sm:$0xff]  ;;  %p609_p1 = scmp.lt.s32.totalorder %s607_s13, %s601_s22 }
  0x19   : > { %523 = vmatpush3.bf16.msra.mxu0 %v590_v2  ;;  %v495_v29 = vld [vmem:[%s837_s4] ss:$0 sm:$0xff]  ;;  %p603_p12 = pnand %p602_p11, %p734_p5 }
  0x1a   : > { %p610_p2 = por %p609_p1, %p608_p0 }
  0x1b   : > { %531 = vmatpush3.bf16.msra.mxu1 %v592_v6  ;;  %p604_p13 = pneg %p603_p12 }
  0x1c   : > { %525 = vmatmul.mubr.msk.bf16.vlgmr.msra.gmra.mxu0 %vm246_vm1, %v222_v4  ;;  %532 = vmatprep.subr.bf16.mxu1 %v663_v1 }
  0x1d   : > { %p611_p3 = pnand %p610_p2, %p604_p13 }
  0x1f   : > { %533 = vmatpush3.bf16.msra.mxu1 %v593_v7 }
  0x20   : > { %534 = vmatprep.subr.bf16.mxu1 %v663_v1 }
  0x23   : > { %535 = vmatpush3.bf16.msra.mxu1 %v594_v8 }
  0x24   : > { %536 = vmatprep.subr.bf16.mxu1 %v663_v1 }
  0x27   : > { %537 = vmatpush3.bf16.msra.mxu1 %v595_v9 }
  0x28   : > { %538 = vmatprep.subr.bf16.mxu1 %v663_v1 }
  0x2b   : > { %539 = vmatpush3.bf16.msra.mxu1 %v596_v10 }
  0x2c   : > { %540 = vmatprep.subr.bf16.mxu1 %v663_v1 }
  0x2f   : > { %541 = vmatpush3.bf16.msra.mxu1 %v597_v11 }
  0x30   : > { %542 = vmatprep.subr.bf16.mxu1 %v663_v1 }
  0x33   : > { %543 = vmatpush3.bf16.msra.mxu1 %v598_v12 }
  0xdc   : > { %v284_v14 = vpop.f32.mrf.mxu0 }
  0xdd   : > { %v285_v15 = vadd.f32 %v491_v13, %v284_v14 }
  0xde   : > { %v526_v16 = vpop.f32.mrf.mxu0 }
  0xdf   : > { %v290_v17 = vmul.f32 %v285_v15, %v285_v15 }
  0xe0   : > { %v287_v18 = vpop.f32.mrf.mxu0 }
  0xe1   : > { %v291_v19 = vmul.f32 %v290_v17, %v285_v15 }
  0xe2   : > { %v527_v20 = vpop.f32.mrf.mxu0 }
  0xe3   : > { %v292_v21 = vmul.f32 0.044715, %v291_v19 }
  0xe5   : > { %v293_v22 = vadd.f32 %v292_v21, %v285_v15 }
  0xe7   : > { %v294_v23 = vmul.f32 0.7978846, %v293_v22 }
  0xe9   : > { %599 = vtanh.f32 %v294_v23 }
  0xf6   : > { %v600_v24 = vpop.eup %599 }
  0xf7   : > { %v296_v25 = vadd.f32 1.0, %v600_v24 }
  0xf9   : > { %v297_v26 = vmul.f32 0.5, %v296_v25 }
  0xfb   : > { %v298_v27 = vmul.f32 %v297_v26, %v285_v15 }
  0xfd   : > { %v299_v28 = vpack.c.bf16 %v298_v27, %v298_v27 }
  0xff   : > { %545 = vmatmul.mubr.bf16.vlgmr.msra.gmra.mxu1 %v299_v28 }
 0x1bf   : > { %v405_v30 = vpop.f32.mrf.mxu1 }
 0x1c0   : > { %v406_v31 = vadd.f32 %v495_v29, %v405_v30 }
 0x1c1   : > { %v546_v32 = vpop.f32.mrf.mxu1 }
 0x1c2   : > { %411 = vst.msk [vmem:[%s215_s30] sm:$0xff] %vm246_vm1, %v406_v31 }
 0x1c3   : > { %v408_v33 = vpop.f32.mrf.mxu1 }
 0x1c4   : > { %614 = shalt.err (!%p611_p3)
}
 0x1c5   : > { %s615_s14 = scalar_lea.hbm %s791_s9, 128  ;;  %s619_s17 = scalar_lea.hbm %s838_s5, 256 }
 0x1c6   : > { %p616_p4 = scmp.ne.s32.totalorder %s791_s9, %s615_s14  ;;  %p620_p9 = scmp.lt.s32.totalorder %s791_s9, %s838_s5 }
 0x1c7   : > { %p621_p10 = scmp.lt.s32.totalorder %s619_s17, %s615_s14 }
 0x1c8   : > { %p617_p7 = pnand %p616_p4, %p734_p5 }
 0x1c9   : > { %p622_p11 = por %p621_p10, %p620_p9 }
 0x1ca   : > { %p618_p8 = pneg %p617_p7 }
 0x1cc   : > { %p623_p12 = pnand %p622_p11, %p618_p8 }
 0x1ce   : > { %626 = shalt.err (!%p623_p12)
}
 0x1cf   : > { %548 = dma.vmem_to_hbm [thread:$0]  (%p734_p5), %s793_s6, 128, %s791_s9, %s413_s10   ;;  %v547_v34 = vpop.f32.mrf.mxu1 }
 0x1d0 PF: > { %p554_p13 = scmp.ge.s32.totalorder %s661_s21, 2  ;;  %s438_s26 = sand.u32 1, %s649_s18  }
 0x1d1   : > { %s439_s30 = scalar_lea.sflag [#allocation3], %s438_s26 }
 0x1d2   : > { %p551_p0 = pnand %p554_p13, %p738_p6 }
 0x1d4   : > { %p552_p1 = pneg %p551_p0 }
 0x1d6   : > { %644 = dma.done.wait (%p552_p1), %s439_s30, 128  }
 0x1d7   : > { %646 = vsyncadd (%p552_p1), %s439_s30, 4294967168  ;;  %p15_p2 = scmp.ge.s32.totalorder %s721_s24, 4   ;;  %s841_s18 = smov %s653_s19 }
 0x1d8   : > { %s842_s19 = smov %s657_s20  ;;  %s843_s20 = smov %s732_s27 }
 0x1d9   : > { %s844_s21 = smov %s721_s24  ;;  %17 = sbr.rel (!%p15_p2) target bundleno = 3 (0x3), region = 75 }
 0x1de   :  { %444 = vsyncpa [#allocation3], 1 }
 0x1df   :  { %446 = vsyncpa [#allocation3 + $0x1], 1 }

</bundles_post_ra>
